<compile_context>
chip_gen: v5e
topology: v5e:2x2
jax: 0.10.0
libtpu: 0.0.40
codegen_flags: <defaults>
</compile_context>

<pallas_src>
import functools

import jax
import jax.numpy as jnp
from jax.experimental import pallas as pl
from jax.experimental.pallas import tpu as pltpu


# ---------------------------------------------------------------------------
# Table construction (mirrors Rotary.__init__ exactly)
# ---------------------------------------------------------------------------
def make_rotary_tables(dim: int, max_seq_len: int):
    dim_quarter = max(1, dim // 4)
    angular_freq = (1.0 / 1024.0) ** jnp.linspace(
        0.0, 1.0, num=dim_quarter, dtype=jnp.float32
    )
    angular_freq = jnp.concatenate(
        [angular_freq, jnp.zeros((dim_quarter,), dtype=jnp.float32)]
    )  # (dim_half,)
    t = jnp.arange(max_seq_len, dtype=jnp.float32)
    theta = jnp.einsum("i,j->ij", t, angular_freq)  # (max_seq_len, dim_half)
    return jnp.cos(theta), jnp.sin(theta)


def prepare_rotary(head_dim: int, num_heads: int, max_seq_len: int,
                   table_dtype=jnp.bfloat16):
    """One-time preprocessing of the rotary tables for the Pallas kernel.

    head_dim % 128 == 0  ->  ("per_head", cos_half, sin_half)
        cos_half/sin_half: (max_seq_len, head_dim//2), tiny, broadcast over
        heads inside the kernel.
    otherwise            ->  ("fused", cos_hd, sinl_hd, sinr_hd)
        (max_seq_len, num_heads*head_dim) zero-masked signed tables for the
        fused-lane double-roll kernel.
    Tables are stored in bf16 (cast to f32 inside the kernel).
    """
    assert head_dim % 2 == 0, "rotary requires an even head_dim"
    dh = head_dim // 2
    cos, sin = make_rotary_tables(head_dim, max_seq_len)
    assert cos.shape[-1] >= dh, "rotary table narrower than head_dim//2"
    cos_h = cos[:, :dh]
    sin_h = sin[:, :dh]

    if head_dim % 128 == 0:
        return ("per_head", cos_h.astype(table_dtype), sin_h.astype(table_dtype))

    zeros = jnp.zeros_like(sin_h)
    cos_full = jnp.concatenate([cos_h, cos_h], axis=-1)   # (Tmax, D)
    sin_lo = jnp.concatenate([sin_h, zeros], axis=-1)     # +sin on lower half
    sin_hi = jnp.concatenate([zeros, -sin_h], axis=-1)    # -sin on upper half
    tile = lambda a: jnp.tile(a, (1, num_heads)).astype(table_dtype)
    return ("fused", tile(cos_full), tile(sin_lo), tile(sin_hi))


# ---------------------------------------------------------------------------
# Kernels
# ---------------------------------------------------------------------------
def _rotary_kernel_fused(x_ref, cos_ref, sinl_ref, sinr_ref, o_ref, *, half):
    # x_ref/o_ref: (1, block_t, H*D); tables: (block_t, H*D) bf16.
    x = x_ref[0].astype(jnp.float32)                      # (block_t, H*D)
    hd = x.shape[-1]
    # Bring each head's upper half into its lower-half slots and vice versa.
    # Cross-head wraparound of the full-axis rolls is killed by the zeros
    # baked into sinl/sinr.  NOTE: pltpu.roll needs a non-negative axis.
    x_lo = pltpu.roll(x, shift=hd - half, axis=1)         # x2 -> x1 slots
    x_hi = pltpu.roll(x, shift=half, axis=1)              # x1 -> x2 slots
    y = (x * cos_ref[...].astype(jnp.float32)
         + x_lo * sinl_ref[...].astype(jnp.float32)
         + x_hi * sinr_ref[...].astype(jnp.float32))
    o_ref[0] = y.astype(o_ref.dtype)


def _rotary_kernel_perhead(x_ref, cos_ref, sin_ref, o_ref, *, half):
    # x_ref/o_ref: (1, block_t, H, D) with D lane-dense (D % 128 == 0);
    # cos_ref/sin_ref: (block_t, D//2) bf16, broadcast over H in-kernel.
    x1 = x_ref[0, :, :, :half].astype(jnp.float32)        # (block_t, H, half)
    x2 = x_ref[0, :, :, half:].astype(jnp.float32)
    cos = cos_ref[...].astype(jnp.float32)[:, None, :]    # (block_t, 1, half)
    sin = sin_ref[...].astype(jnp.float32)[:, None, :]
    o_ref[0, :, :, :half] = (x1 * cos + x2 * sin).astype(o_ref.dtype)
    o_ref[0, :, :, half:] = (x2 * cos - x1 * sin).astype(o_ref.dtype)


# ---------------------------------------------------------------------------
# Tiling / compiler-parameter helpers
# ---------------------------------------------------------------------------
def _tile_target_f32_bytes() -> int:
    try:
        cap = pltpu.get_tpu_info().vmem_capacity_bytes
    except Exception:
        cap = 64 << 20
    # ~4 MiB f32-equivalent tiles on 128 MiB-VMEM chips (v5e/v6e),
    # ~2 MiB on 64 MiB-VMEM chips (v7x) to stay under the scoped limit with
    # double-buffered x/out + tables + live temporaries.
    return (4 << 20) if cap >= (100 << 20) else (2 << 20)


def _choose_block_t(T: int, per_token_elems: int) -> int:
    bt = max(8, _tile_target_f32_bytes() // (per_token_elems * 4))
    bt = min(bt, T)
    if bt < T:
        # Even out tiles (round T/n up to a multiple of 8) so the last tile
        # isn't a tiny ragged remainder paying full per-step overhead.
        n = pl.cdiv(T, bt)
        bt = min(T, ((pl.cdiv(T, n) + 7) // 8) * 8)
    return bt


def _compiler_params():
    # t axis leads the grid -> megacore shards the (usually long) T axis on
    # v7x; the B axis is innermost per core so table blocks stay resident.
    kwargs = dict(dimension_semantics=("parallel", "parallel"))
    try:
        cap = pltpu.get_tpu_info().vmem_capacity_bytes
        kwargs["vmem_limit_bytes"] = int(min(cap // 2, 96 * 1024 * 1024))
    except Exception:
        pass  # fall back to the compiler default scoped limit
    return pltpu.CompilerParams(**kwargs)


# ---------------------------------------------------------------------------
# Forward wrapper
# ---------------------------------------------------------------------------
def rotary_forward(x_BTHD, rotary_tables, *, block_t=None):
    """Apply rotary embedding.  x_BTHD: [B, T, H, D]; rotary_tables from
    prepare_rotary(head_dim=D, num_heads=H, max_seq_len>=T)."""
    B, T, H, D = x_BTHD.shape
    assert D % 2 == 0, "rotary requires an even head_dim"
    half = D // 2

    if block_t is None:
        block_t = _choose_block_t(T, H * D)
    n_t = pl.cdiv(T, block_t)
    cparams = _compiler_params()

    kind = rotary_tables[0]
    if kind == "per_head":
        cos_t, sin_t = rotary_tables[1], rotary_tables[2]
        assert cos_t.shape[0] >= T, "sequence longer than rotary table"
        assert cos_t.shape[-1] == half
        return pl.pallas_call(
            functools.partial(_rotary_kernel_perhead, half=half),
            out_shape=jax.ShapeDtypeStruct((B, T, H, D), x_BTHD.dtype),
            grid_spec=pltpu.PrefetchScalarGridSpec(
                num_scalar_prefetch=0,
                grid=(n_t, B),
                in_specs=[
                    pl.BlockSpec((1, block_t, H, D), lambda t, b: (b, t, 0, 0)),
                    pl.BlockSpec((block_t, half), lambda t, b: (t, 0)),
                    pl.BlockSpec((block_t, half), lambda t, b: (t, 0)),
                ],
                out_specs=pl.BlockSpec((1, block_t, H, D),
                                       lambda t, b: (b, t, 0, 0)),
            ),
            compiler_params=cparams,
        )(x_BTHD, cos_t, sin_t)

    # Fused-lane fallback (head_dim not a multiple of 128).
    cos_hd, sinl_hd, sinr_hd = rotary_tables[1], rotary_tables[2], rotary_tables[3]
    HD = H * D
    assert cos_hd.shape[-1] == HD and cos_hd.shape[0] >= T
    x = x_BTHD.reshape(B, T, HD)  # contiguous (H,D) collapse -> zero-copy view
    out = pl.pallas_call(
        functools.partial(_rotary_kernel_fused, half=half),
        out_shape=jax.ShapeDtypeStruct((B, T, HD), x.dtype),
        grid_spec=pltpu.PrefetchScalarGridSpec(
            num_scalar_prefetch=0,
            grid=(n_t, B),  # B innermost: table blocks reused across batch
            in_specs=[
                pl.BlockSpec((1, block_t, HD), lambda t, b: (b, t, 0)),
                pl.BlockSpec((block_t, HD), lambda t, b: (t, 0)),
                pl.BlockSpec((block_t, HD), lambda t, b: (t, 0)),
                pl.BlockSpec((block_t, HD), lambda t, b: (t, 0)),
            ],
            out_specs=pl.BlockSpec((1, block_t, HD), lambda t, b: (b, t, 0)),
        ),
        compiler_params=cparams,
    )(x, cos_hd, sinl_hd, sinr_hd)
    return out.reshape(B, T, H, D)


# ---------------------------------------------------------------------------
# Pure-JAX reference (direct transcription of the PyTorch forward)
# ---------------------------------------------------------------------------
def rotary_reference(x_BTHD, cos_table, sin_table):
    T = x_BTHD.shape[-3]
    dh = x_BTHD.shape[-1] // 2
    cos = cos_table[None, :T, None, :dh]
    sin = sin_table[None, :T, None, :dh]
    xf = x_BTHD.astype(jnp.float32)
    x1, x2 = xf[..., :dh], xf[..., dh:]
    y1 = x1 * cos + x2 * sin
    y2 = x1 * (-sin) + x2 * cos
    return jnp.concatenate([y1, y2], axis=-1).astype(x_BTHD.dtype)


def _check(name, x, out, cos_t, sin_t):
    ref = rotary_reference(x, cos_t, sin_t)
    assert out.shape == x.shape and out.dtype == x.dtype
    # bf16 tables are an approximation of the f32 module buffers; tolerance
    # chosen accordingly (structural errors would be O(1)).
    ok = jnp.allclose(out.astype(jnp.float32), ref.astype(jnp.float32),
                      atol=3e-2, rtol=2e-2)
    assert bool(ok), f"{name}: Pallas rotary output mismatch vs reference"


if __name__ == "__main__":
    key = jax.random.PRNGKey(0)
    k1, k2 = jax.random.split(key)
    max_seq_len = 16

    # Case 1: fused-lane fallback path (head_dim not a multiple of 128).
    B, T, H, D = 2, 8, 4, 32
    cos_t, sin_t = make_rotary_tables(D, max_seq_len)
    tables = prepare_rotary(D, H, max_seq_len)
    x = jax.random.normal(k1, (B, T, H, D), dtype=jnp.float32).astype(jnp.bfloat16)
    out = jax.block_until_ready(rotary_forward(x, tables))
    _check("fused", x, out, cos_t, sin_t)

    # Case 2: per-head fast path (head_dim % 128 == 0) with tiny un-tiled tables.
    B2, T2, H2, D2 = 2, 16, 2, 128
    cos_t2, sin_t2 = make_rotary_tables(D2, max_seq_len)
    tables2 = prepare_rotary(D2, H2, max_seq_len)
    x2 = jax.random.normal(k2, (B2, T2, H2, D2), dtype=jnp.float32).astype(jnp.bfloat16)
    out2 = jax.block_until_ready(rotary_forward(x2, tables2))
    _check("per_head", x2, out2, cos_t2, sin_t2)

    print("KERNEL_OK")
</pallas_src>

<mosaic_0001>
module attributes {stable_mosaic.version = 11 : i64} {
  func.func @_rotary_kernel_fused(%arg0: i32, %arg1: i32, %arg2: memref<1x8x128xbf16, #tpu.memory_space<vmem>>, %arg3: memref<8x128xbf16, #tpu.memory_space<vmem>>, %arg4: memref<8x128xbf16, #tpu.memory_space<vmem>>, %arg5: memref<8x128xbf16, #tpu.memory_space<vmem>>, %arg6: memref<1x8x128xbf16, #tpu.memory_space<vmem>>) attributes {dimension_semantics = [#tpu.dimension_semantics<parallel>, #tpu.dimension_semantics<parallel>], iteration_bounds = array<i64: 1, 2>, scalar_prefetch = 0 : i64, scratch_operands = 0 : i64, tpu.core_type = #tpu.core_type<tc>, window_params = [{transform_indices = @transform_0, window_bounds = array<i64: 1, 8, 128>}, {transform_indices = @transform_1, window_bounds = array<i64: 8, 128>}, {transform_indices = @transform_2, window_bounds = array<i64: 8, 128>}, {transform_indices = @transform_3, window_bounds = array<i64: 8, 128>}, {transform_indices = @transform_4, window_bounds = array<i64: 1, 8, 128>}]} {
    %c0 = arith.constant 0 : index
    %c0_0 = arith.constant 0 : index
    %c0_1 = arith.constant 0 : index
    %0 = vector.load %arg2[%c0, %c0_0, %c0_1] : memref<1x8x128xbf16, #tpu.memory_space<vmem>>, vector<1x8x128xbf16>
    %1 = vector.shape_cast %0 : vector<1x8x128xbf16> to vector<8x128xbf16>
    %2 = arith.extf %1 : vector<8x128xbf16> to vector<8x128xf32>
    %c112_i32 = arith.constant 112 : i32
    %3 = tpu.dynamic_rotate %2 by %c112_i32 dim 1 : vector<8x128xf32>, i32 -> vector<8x128xf32>
    %c16_i32 = arith.constant 16 : i32
    %4 = tpu.dynamic_rotate %2 by %c16_i32 dim 1 : vector<8x128xf32>, i32 -> vector<8x128xf32>
    %c0_2 = arith.constant 0 : index
    %c0_3 = arith.constant 0 : index
    %5 = vector.load %arg3[%c0_2, %c0_3] : memref<8x128xbf16, #tpu.memory_space<vmem>>, vector<8x128xbf16>
    %6 = arith.extf %5 : vector<8x128xbf16> to vector<8x128xf32>
    %7 = arith.mulf %2, %6 : vector<8x128xf32>
    %c0_4 = arith.constant 0 : index
    %c0_5 = arith.constant 0 : index
    %8 = vector.load %arg4[%c0_4, %c0_5] : memref<8x128xbf16, #tpu.memory_space<vmem>>, vector<8x128xbf16>
    %9 = arith.extf %8 : vector<8x128xbf16> to vector<8x128xf32>
    %10 = arith.mulf %3, %9 : vector<8x128xf32>
    %11 = arith.addf %7, %10 : vector<8x128xf32>
    %c0_6 = arith.constant 0 : index
    %c0_7 = arith.constant 0 : index
    %12 = vector.load %arg5[%c0_6, %c0_7] : memref<8x128xbf16, #tpu.memory_space<vmem>>, vector<8x128xbf16>
    %13 = arith.extf %12 : vector<8x128xbf16> to vector<8x128xf32>
    %14 = arith.mulf %4, %13 : vector<8x128xf32>
    %15 = arith.addf %11, %14 : vector<8x128xf32>
    %16 = arith.truncf %15 : vector<8x128xf32> to vector<8x128xbf16>
    %c0_8 = arith.constant 0 : index
    %c0_9 = arith.constant 0 : index
    %c0_10 = arith.constant 0 : index
    %17 = vector.load %arg6[%c0_8, %c0_9, %c0_10] : memref<1x8x128xbf16, #tpu.memory_space<vmem>>, vector<1x8x128xbf16>
    %18 = vector.shape_cast %17 : vector<1x8x128xbf16> to vector<8x128xbf16>
    %19 = vector.shape_cast %16 : vector<8x128xbf16> to vector<1x8x128xbf16>
    tpu.vector_store %arg6[%c0_8, %c0_9, %c0_10], %19 {strides = array<i32>} : memref<1x8x128xbf16, #tpu.memory_space<vmem>>, vector<1x8x128xbf16>,
    return
  }
  func.func @transform_0(%arg0: i32, %arg1: i32) -> (i32, i32, i32) {
    %c0_i32 = arith.constant 0 : i32
    %c0_i32_0 = arith.constant 0 : i32
    return %arg1, %arg0, %c0_i32 : i32, i32, i32
  }
  func.func @transform_1(%arg0: i32, %arg1: i32) -> (i32, i32) {
    %c0_i32 = arith.constant 0 : i32
    %c0_i32_0 = arith.constant 0 : i32
    return %arg0, %c0_i32 : i32, i32
  }
  func.func @transform_2(%arg0: i32, %arg1: i32) -> (i32, i32) {
    %c0_i32 = arith.constant 0 : i32
    %c0_i32_0 = arith.constant 0 : i32
    return %arg0, %c0_i32 : i32, i32
  }
  func.func @transform_3(%arg0: i32, %arg1: i32) -> (i32, i32) {
    %c0_i32 = arith.constant 0 : i32
    %c0_i32_0 = arith.constant 0 : i32
    return %arg0, %c0_i32 : i32, i32
  }
  func.func @transform_4(%arg0: i32, %arg1: i32) -> (i32, i32, i32) {
    %c0_i32 = arith.constant 0 : i32
    %c0_i32_0 = arith.constant 0 : i32
    return %arg1, %arg0, %c0_i32 : i32, i32, i32
  }
}

</mosaic_0001>

<bundles_post_ra>
// kernel: tpu_custom_call.1
= control target key start
LH: loop header
LB: loop body
LE: loop exit
PB: predicated region body
PF: predicated region fallthrough
CT: control target
= control target key end

     0   :  { %9 = vsyncpa [#allocation3], 0  ;;  %s963_s0 = inlined_call_operand.hbm [shape: bf16[2,8,128], index: 0, kind: input, shape index: {}]   ;;  %s964_s1 = inlined_call_operand.hbm [shape: bf16[16,128], index: 1, kind: input, shape index: {}]   ;;  %s965_s2 = inlined_call_operand.hbm [shape: bf16[16,128], index: 2, kind: input, shape index: {}]   ;;  %s966_s3 = inlined_call_operand.hbm [shape: bf16[16,128], index: 3, kind: input, shape index: {}]   ;;  %s967_s4 = inlined_call_operand.hbm [shape: bf16[2,8,128], index: 4, kind: output, shape index: {}]  }
   0x1   :  { %11 = vsyncpa [#allocation3 + $0x1], 0 }
   0x2   :  { %12 = vsyncpa [#allocation6], 0 }
   0x3   :  { %13 = vsyncpa [#allocation9], 0 }
   0x4   :  { %14 = vsyncpa [#allocation4], 0 }
   0x5   :  { %16 = vsyncpa [#allocation4 + $0x1], 0  ;;  %s804_s15 = smov 0   ;;  %s806_s16 = smov 0  }
   0x6   :  { %s808_s17 = smov 0   ;;  %s810_s18 = smov 0  }
   0x7   :  { %s812_s19 = smov 0   ;;  %s814_s20 = smov 0  }
   0x8 LB: > { %s448_s21 = sadd.s32 4294967295, %s772_s20   ;;  %s449_s22 = sadd.s32 4294967294, %s772_s20   ;;  %s772_s20 = sphi %s814_s20, %s22_s20   ;;  %s768_s19 = sphi %s812_s19, %s979_s19   ;;  %s764_s18 = sphi %s810_s18, %s978_s18   ;;  %s760_s17 = sphi %s808_s17, %s977_s17   ;;  %s756_s16 = sphi %s806_s16, %s976_s16   ;;  %s752_s15 = sphi %s804_s15, %s975_s15  }
   0x9   : > { %p56_p0 = scmp.ne.s32.totalorder %s756_s16, %s752_s15  ;;  %p838_p1 = scmp.eq.s32.totalorder %s448_s21, 0 }
   0xa   : > { %p842_p2 = scmp.eq.s32.totalorder %s448_s21, 1  ;;  %p166_p3 = scmp.eq.s32.totalorder %s449_s22, 1 }
   0xb   : > { %p848_p4 = por %p838_p1, %p56_p0  ;;  %p450_p5 = scmp.ge.s32.totalorder %s772_s20, 1 }
   0xc   : > { %p853_p6 = por %p166_p3, %p56_p0  ;;  %p173_p7 = scmp.lt.s32.totalorder %s772_s20, 3 }
   0xd   : > { %s187_s29 = sshll.u32 %s964_s1, 4  ;;  %p454_p9 = scmp.ge.s32.totalorder %s772_s20, 2  ;;  %s188_s29 = int_to_ptr.hbm [resolvable:$true] %s187_s29 }
   0xe   : > { %p861_p8 = pnand %p450_p5, %p173_p7  ;;  %s774_s5 = smov [#allocation5]  }
   0xf   : > { %s189_s6 = sshll.u32 %s774_s5, 4  ;;  %s201_s9 = sshll.u32 %s965_s2, 4  ;;  %s190_s6 = int_to_ptr.vmem [resolvable:$true] %s189_s6  ;;  %s202_s9 = int_to_ptr.hbm [resolvable:$true] %s201_s9 }
  0x10   : > { %p483_p10 = pneg %p861_p8  ;;  %s215_s12 = sshll.u32 %s966_s3, 4  ;;  %s216_s12 = int_to_ptr.hbm [resolvable:$true] %s215_s12 }
  0x11   : > { %s775_s13 = smov [#allocation7]   ;;  %s776_s21 = smov [#allocation8]  }
  0x12   : > { %p484_p11 = pnand %p483_p10, %p838_p1  ;;  %s203_s14 = sshll.u32 %s775_s13, 4  ;;  %s204_s14 = int_to_ptr.vmem [resolvable:$true] %s203_s14 }
  0x13   : > { %s217_s22 = sshll.u32 %s776_s21, 4  ;;  %s31_s27 = sadd.s32 1, %s768_s19  ;;  %s218_s22 = int_to_ptr.vmem [resolvable:$true] %s217_s22 }
  0x14   : > { %486 = dma.hbm_to_vmem [thread:$0]  (!%p484_p11), %s188_s29, 64, %s190_s6, [#allocation6]  }
  0x15   : > { %489 = dma.hbm_to_vmem [thread:$0]  (!%p484_p11), %s202_s9, 64, %s204_s14, [#allocation6]  }
  0x16   : > { %492 = dma.hbm_to_vmem [thread:$0]  (!%p484_p11), %s216_s12, 64, %s218_s22, [#allocation9]  }
  0x17   : > { %p32_p12 = scmp.ge.s32.totalorder %s31_s27, 2  ;;  %s43_s28 = sadd.s32 1, %s760_s17 }
  0x18   : > { %p50_p13 = scmp.ne.s32.totalorder %s760_s17, %s756_s16  ;;  %p51_p0 = scmp.eq.s32.totalorder %s772_s20, 0 }
  0x19   : > { %s981_s27 = smov (%p32_p12, %s31_s27), 0  ;;  %p504_p7 = scmp.lt.s32.totalorder %s772_s20, 2 }
  0x1a   : > { %p883_p3 = por %p51_p0, %p50_p13  ;;  %p889_p5 = por %p842_p2, %p50_p13 }
  0x1b   : > { %s38_s6 = ssub.s32 %s768_s19, %s981_s27  ;;  %s228_s7 = sand.u32 1, %s760_s17  }
  0x1c   : > { %p41_p10 = scmp.eq.s32.totalorder %s38_s6, 0  ;;  %s455_s8 = sshll.u32 %s228_s7, 2 }
  0x1d   : > { %s456_s10 = sshll.u32 %s768_s19, 2  ;;  %s232_s14 = scalar_lea.vmem [#allocation2], %s455_s8 }
  0x1e   : > { %s898_s9 = scalar_select %p41_p10, %s760_s17, %s43_s28  }
  0x1f   : > { %s237_s13 = scalar_lea.hbm %s963_s0, %s456_s10  ;;  %s241_s21 = sshll.u32 %s232_s14, 4  ;;  %s242_s21 = int_to_ptr.vmem [resolvable:$true] %s241_s21 }
  0x20   : > { %s239_s24 = sshll.u32 %s237_s13, 4  ;;  %p494_p2 = pnand %p504_p7, %p883_p3  ;;  %s240_s24 = int_to_ptr.hbm [resolvable:$true] %s239_s24 }
  0x21   : > { %s229_s22 = scalar_lea.sflag [#allocation3], %s228_s7  ;;  %250 = sbr.rel (%p861_p8) target bundleno = 178 (0xb2), region = 36 }
  0x22   : > { %496 = dma.hbm_to_vmem [thread:$0]  (!%p494_p2), %s240_s24, 64, %s242_s21, %s229_s22  }
  0x23   : > { %s909_s28 = sand.u32 (!%p861_p8), 1, %s756_s16  }
  0x24   : > { %s458_s6 = sshll.u32 (!%p861_p8), %s909_s28, 2  ;;  %s253_s10 = scalar_lea.sflag (!%p861_p8), [#allocation3], %s909_s28 }
  0x25   : > { %s256_s8 = scalar_lea.vmem (!%p861_p8), [#allocation2], %s458_s6 }
  0x26   : > { %735 = dma.done.wait (%p848_p4), %s253_s10, 64  }
  0x27   : > { %737 = vsyncadd (%p848_p4), %s253_s10, 4294967232 }
  0x28   : > { %739 = dma.done.wait (%p838_p1), [#allocation6], 128  }
  0x29   : > { %741 = vsyncadd (%p838_p1), [#allocation6], 4294967168 }
  0x2a   : > { %743 = dma.done.wait (%p838_p1), [#allocation9], 64  }
  0x2b   : > { %745 = vsyncadd (%p838_p1), [#allocation9], 4294967232  ;;  %v297_v0 = vld [vmem:[%s256_s8] sm:$0xf]  ;;  %s777_s30 = smov 112   ;;  %s778_s29 = smov 16  }
  0x2c   : > { %v298_v1 = vunpack.c.l.bf16 %v297_v0  ;;  %v303_v2 = vld [vmem:[#allocation5] sm:$0xf]  ;;  %v306_v3 = vld [vmem:[#allocation7] sm:$0xf]  ;;  %v310_v7 = vld [vmem:[#allocation8] sm:$0xf] }
  0x2d   : > { %v304_v5 = vunpack.c.l.bf16 %v303_v2  ;;  %v307_v6 = vunpack.c.l.bf16 %v306_v3  ;;  %s464_s25 = sshll.u32 %s764_s18, 2  ;;  %v311_v10 = vunpack.c.l.bf16 %v310_v7  ;;  %s296_s12 = scalar_lea.vmem [#allocation10], %s458_s6 }
  0x2e   : > { %299 = vrot.lane.b32.xlu0 %v298_v1, %s777_s30  ;;  %s328_s11 = scalar_lea.hbm %s967_s4, %s464_s25  ;;  %s330_s13 = sshll.u32 %s296_s12, 4  ;;  %s331_s13 = int_to_ptr.vmem [resolvable:$true] %s330_s13 }
  0x2f   : > { %v305_v8 = vmul.f32 %v304_v5, %v298_v1  ;;  %s332_s14 = sshll.u32 %s328_s11, 4  ;;  %s317_s18 = scalar_lea.sflag [#allocation4], %s909_s28  ;;  %s333_s14 = int_to_ptr.hbm [resolvable:$true] %s332_s14 }
  0x30   : > { %s696_s21 = sshra.s32 %s333_s14, 4  ;;  %s702_s8 = scalar_lea.hbm %s967_s4, 8  ;;  %s697_s21 = int_to_ptr.hbm [resolvable:$true] %s696_s21 }
  0x31   : > { %s698_s24 = scalar_lea.hbm %s697_s21, 4  ;;  %p703_p11 = scmp.lt.s32.totalorder %s697_s21, %s967_s4 }
  0x32   : > { %p699_p1 = scmp.ne.s32.totalorder %s697_s21, %s698_s24  ;;  %p704_p12 = scmp.lt.s32.totalorder %s702_s8, %s698_s24 }
  0x34   : > { %p700_p4 = pnand %p699_p1, %p889_p5  ;;  %p705_p13 = por %p704_p12, %p703_p11 }
  0x36   : > { %301 = vrot.lane.b32.xlu0 %v298_v1, %s778_s29  ;;  %p701_p8 = pneg %p700_p4 }
  0x38   : > { %p706_p0 = pnand %p705_p13, %p701_p8 }
  0xa0   : > { %v300_v4 = vpop.permute.xlu0 %299 }
  0xa1   : > { %v308_v9 = vmul.f32 %v307_v6, %v300_v4 }
  0xa3   : > { %v309_v12 = vadd.f32 %v308_v9, %v305_v8 }
  0xa8   : > { %v302_v11 = vpop.permute.xlu0 %301 }
  0xa9   : > { %v312_v13 = vmul.f32 %v311_v10, %v302_v11 }
  0xab   : > { %v313_v14 = vadd.f32 %v312_v13, %v309_v12 }
  0xad   : > { %v314_v15 = vpack.c.bf16 %v313_v14, %v313_v14 }
  0xaf   : > { %315 = vst [vmem:[%s296_s12] sm:$0xf] %v314_v15 }
  0xb0   : > { %709 = shalt.err (!%p706_p0)
}
  0xb1   : > { %481 = dma.vmem_to_hbm [thread:$0]  (%p889_p5), %s331_s13, 64, %s333_s14, %s317_s18  }
  0xb2 PF: > { %s344_s28 = sand.u32 1, %s752_s15   ;;  %p498_p3 = pnand %p454_p9, %p853_p6 }
  0xb3   : > { %s345_s29 = scalar_lea.sflag [#allocation4], %s344_s28 }
  0xb4   : > { %p499_p7 = pneg %p498_p3 }
  0xb6   : > { %747 = dma.done.wait (%p499_p7), %s345_s29, 64  }
  0xb7   : > { %749 = vsyncadd (%p499_p7), %s345_s29, 4294967232  ;;  %s22_s20 = sadd.s32 1, %s772_s20   ;;  %s975_s15 = smov %s756_s16 }
  0xb8   : > { %p19_p10 = scmp.ge.s32.totalorder %s22_s20, 4   ;;  %s976_s16 = smov %s760_s17 }
  0xb9   : > { %s977_s17 = smov %s898_s9  ;;  %s978_s18 = smov %s768_s19 }
  0xba   : > { %s979_s19 = smov %s981_s27  ;;  %21 = sbr.rel (!%p19_p10) target bundleno = 8 (0x8), region = 96 }
  0xbf   :  { %351 = vsyncpa [#allocation3], 1 }
  0xc0   :  { %353 = vsyncpa [#allocation3 + $0x1], 1 }
  0xc1   :  { %354 = vsyncpa [#allocation6], 1 }
  0xc2   :  { %355 = vsyncpa [#allocation9], 1 }
  0xc3   :  { %356 = vsyncpa [#allocation4], 1 }
  0xc4   :  { %358 = vsyncpa [#allocation4 + $0x1], 1 }

</bundles_post_ra>
